<compile_context>
chip_gen: v6e
topology: v6e:2x2x1
jax: 0.10.0
libtpu: 0.0.40
codegen_flags: <defaults>
</compile_context>

<pallas_src>
import functools

import jax
import jax.numpy as jnp
from jax.experimental import pallas as pl
from jax.experimental.pallas import tpu as pltpu


def _h_sigmoid_kernel(x_ref, o_ref, *, h_max):
    x = x_ref[...]
    # relu6(x + 3) * h_max / 6, computed in the input dtype.  h_max/6 is
    # pre-folded into one constant (<= 1 ulp vs multiply-then-divide).
    o_ref[...] = (jnp.clip(x + 3.0, 0.0, 6.0) * (h_max / 6.0)).astype(o_ref.dtype)


@functools.lru_cache(maxsize=None)
def _tpu_params():
    """(tile_budget_bytes, grid_dimension_semantics) tuned per TPU generation."""
    budget = 2 << 20          # v5e/v6e: 2 MiB tiles sit at the HBM-roofline plateau
    sem = "parallel"
    try:
        kind = jax.devices()[0].device_kind.lower()
        if "v7" in kind or "tpu7" in kind:
            budget = 4 << 20           # 3.2 TB/s HBM: amortize per-grid-step overhead
            sem = pltpu.CORE_PARALLEL  # 2 TensorCores/chip: shard row tiles across both
    except Exception:
        pass
    return budget, sem


def _streamed(flat, n, h_max, budget, sem):
    """Fast path: n is a multiple of 128.  Zero-copy reshape, tiled 1-D grid."""
    dtype = flat.dtype
    itemsize = dtype.itemsize
    # Packed-dtype sublane granularity: 8 rows (f32), 16 (bf16).
    sublane = max(8, 32 // itemsize)

    # Widest lane count that divides n -> wide unmasked stores, fewer rows.
    lanes = 128
    for cand in (1024, 512, 256):
        if n % cand == 0:
            lanes = cand
            break
    rows = n // lanes
    x2d = flat.reshape(rows, lanes)

    # Row tile from the per-tile byte budget, rounded to the sublane packing.
    tr = max(sublane, (budget // (lanes * itemsize)) // sublane * sublane)
    tr = min(rows, tr)  # full-extent block when the slab is small

    # Last block may be partial: masked by Pallas, no padding pass needed.
    grid = (pl.cdiv(rows, tr),)

    tile_bytes = tr * lanes * itemsize
    # Cover double-buffered in+out tiles with headroom, but never request the
    # whole 64 MiB/TC of v7x VMEM (leave room for compiler scratch).
    vmem_limit = int(min(48 << 20, max(32 << 20, 6 * tile_bytes)))

    out2d = pl.pallas_call(
        functools.partial(_h_sigmoid_kernel, h_max=h_max),
        out_shape=jax.ShapeDtypeStruct((rows, lanes), dtype),
        grid_spec=pltpu.PrefetchScalarGridSpec(
            num_scalar_prefetch=0,
            grid=grid,
            # TODO(synk): on v7x, sweep pipeline_mode=pl.Buffered(3) here (~2-5%).
            in_specs=[pl.BlockSpec((tr, lanes), lambda i: (i, 0))],
            out_specs=pl.BlockSpec((tr, lanes), lambda i: (i, 0)),
        ),
        compiler_params=pltpu.CompilerParams(
            dimension_semantics=(sem,),
            vmem_limit_bytes=vmem_limit,
        ),
    )(x2d)
    return out2d.reshape(-1)


def _single_block(flat_piece, h_max):
    """Micro-call for a ragged remainder (< 128 elements): one whole-array block."""
    m = flat_piece.shape[0]
    out = pl.pallas_call(
        functools.partial(_h_sigmoid_kernel, h_max=h_max),
        out_shape=jax.ShapeDtypeStruct((1, m), flat_piece.dtype),
    )(flat_piece.reshape(1, m))
    return out.reshape(-1)


def h_sigmoid(x, h_max: float = 1.0, target_tile_bytes=None):
    """Elementwise hard-sigmoid: relu6(x + 3) * h_max / 6.  Any shape, float dtype."""
    if not jnp.issubdtype(x.dtype, jnp.floating):
        raise TypeError(f"h_sigmoid expects a floating dtype, got {x.dtype}")
    orig_shape = x.shape
    n = int(x.size)
    if n == 0:
        return x
    h_max = float(h_max)

    budget, sem = _tpu_params()
    if target_tile_bytes is not None:
        budget = int(target_tile_bytes)
    # Clamp so 6 * tile stays <= 48 MiB (safe inside v7x's 64 MiB/TC VMEM).
    budget = max(64 << 10, min(8 << 20, budget))

    flat = x.reshape(-1)

    if n % 128 == 0:
        # Zero-copy fast path: covers essentially all NCHW activation tensors.
        out = _streamed(flat, n, h_max, budget, sem)
    else:
        n_main = (n // 128) * 128
        if n_main == 0:
            out = _single_block(flat, h_max)  # tiny ragged tensor
        else:
            # Rare path: stream the 128-aligned body, micro-call the <128-element
            # tail, stitch once (no whole-array pad / slice passes).
            main = _streamed(flat[:n_main], n_main, h_max, budget, sem)
            tail = _single_block(flat[n_main:], h_max)
            out = jnp.concatenate([main, tail])

    return out.reshape(orig_shape)


if __name__ == "__main__":
    key = jax.random.PRNGKey(0)

    def ref_fn(x, h_max=1.0):
        return jnp.clip(x + 3.0, 0.0, 6.0) * h_max / 6.0

    # 1) NCHW f32, small DyHead-like shape (2*4*16*16 = 2048, 128-aligned).
    x = jax.random.normal(key, (2, 4, 16, 16), dtype=jnp.float32) * 4.0
    y = jax.block_until_ready(h_sigmoid(x, h_max=1.0))
    assert y.shape == x.shape and y.dtype == x.dtype
    assert jnp.allclose(y, ref_fn(x), atol=1e-6, rtol=1e-6)

    # 2) bf16 input (packed sublane granularity, math kept in bf16).
    xb = x.astype(jnp.bfloat16)
    yb = jax.block_until_ready(h_sigmoid(xb, h_max=1.0))
    assert yb.dtype == jnp.bfloat16
    assert jnp.allclose(
        yb.astype(jnp.float32), ref_fn(xb).astype(jnp.float32), atol=1e-2, rtol=1e-2
    )

    # 3) Small ragged shape (< 128 elements): single-block micro-call path.
    xr = jax.random.normal(key, (3, 5, 7), dtype=jnp.float32) * 4.0
    yr = jax.block_until_ready(h_sigmoid(xr, h_max=1.0))
    assert jnp.allclose(yr, ref_fn(xr), atol=1e-6, rtol=1e-6)

    # 4) Larger ragged shape (>=128, not 128-aligned): streamed body + tail stitch.
    xg = jax.random.normal(key, (3, 7, 11), dtype=jnp.float32) * 4.0
    yg = jax.block_until_ready(h_sigmoid(xg, h_max=1.0))
    assert jnp.allclose(yg, ref_fn(xg), atol=1e-6, rtol=1e-6)

    # 5) Multi-step grid (small tile budget forces several grid iterations).
    xm = jax.random.normal(key, (2, 16, 32, 32), dtype=jnp.float32)
    ym = jax.block_until_ready(h_sigmoid(xm, h_max=2.0, target_tile_bytes=64 << 10))
    assert jnp.allclose(ym, ref_fn(xm, h_max=2.0), atol=1e-6, rtol=1e-6)

    # 6) Non-dividing last row block (rows=65, tile=64 -> masked 1-row tail).
    xp = jax.random.normal(key, (1, 130, 128), dtype=jnp.float32) * 4.0
    yp = jax.block_until_ready(h_sigmoid(xp, h_max=1.0, target_tile_bytes=64 << 10))
    assert jnp.allclose(yp, ref_fn(xp), atol=1e-6, rtol=1e-6)

    # TODO(synk): best end-to-end perf comes from fusing this elementwise op into
    # the producing/consuming DyHead kernel instead of a standalone HBM round trip.
    print("KERNEL_OK")
</pallas_src>

<mosaic_0001>
module attributes {stable_mosaic.version = 11 : i64} {
  func.func @_h_sigmoid_kernel(%arg0: i32, %arg1: memref<2x1024xf32, #tpu.memory_space<vmem>>, %arg2: memref<2x1024xf32, #tpu.memory_space<vmem>>) attributes {dimension_semantics = [#tpu.dimension_semantics<parallel>], iteration_bounds = array<i64: 1>, scalar_prefetch = 0 : i64, scratch_operands = 0 : i64, tpu.core_type = #tpu.core_type<tc>, window_params = [{transform_indices = @transform_0, window_bounds = array<i64: 2, 1024>}, {transform_indices = @transform_1, window_bounds = array<i64: 2, 1024>}]} {
    %c0 = arith.constant 0 : index
    %c0_0 = arith.constant 0 : index
    %0 = vector.load %arg1[%c0, %c0_0] : memref<2x1024xf32, #tpu.memory_space<vmem>>, vector<2x1024xf32>
    %cst = arith.constant 3.000000e+00 : f32
    %1 = vector.broadcast %cst : f32 to vector<2x1024xf32>
    %2 = arith.addf %0, %1 : vector<2x1024xf32>
    %cst_1 = arith.constant 0.000000e+00 : f32
    %cst_2 = arith.constant 6.000000e+00 : f32
    %3 = vector.broadcast %cst_1 : f32 to vector<2x1024xf32>
    %4 = arith.maximumf %3, %2 : vector<2x1024xf32>
    %5 = vector.broadcast %cst_2 : f32 to vector<2x1024xf32>
    %6 = arith.minimumf %5, %4 : vector<2x1024xf32>
    %cst_3 = arith.constant 0.166666672 : f32
    %7 = vector.broadcast %cst_3 : f32 to vector<2x1024xf32>
    %8 = arith.mulf %6, %7 : vector<2x1024xf32>
    %c0_4 = arith.constant 0 : index
    %c0_5 = arith.constant 0 : index
    %9 = vector.load %arg2[%c0_4, %c0_5] : memref<2x1024xf32, #tpu.memory_space<vmem>>, vector<2x1024xf32>
    tpu.vector_store %arg2[%c0_4, %c0_5], %8 {strides = array<i32>} : memref<2x1024xf32, #tpu.memory_space<vmem>>, vector<2x1024xf32>,
    return
  }
  func.func @transform_0(%arg0: i32) -> (i32, i32) {
    %c0_i32 = arith.constant 0 : i32
    %c0_i32_0 = arith.constant 0 : i32
    return %arg0, %c0_i32 : i32, i32
  }
  func.func @transform_1(%arg0: i32) -> (i32, i32) {
    %c0_i32 = arith.constant 0 : i32
    %c0_i32_0 = arith.constant 0 : i32
    return %arg0, %c0_i32 : i32, i32
  }
}

</mosaic_0001>

<bundles_post_ra>
// kernel: tpu_custom_call.1
= control target key start
LH: loop header
LB: loop body
LE: loop exit
PB: predicated region body
PF: predicated region fallthrough
CT: control target
= control target key end

     0   :  { %6 = vsyncpa [#allocation3], 0  ;;  %s112_s0 = inlined_call_operand.hbm [shape: f32[2,1024], index: 0, kind: input, shape index: {}]   ;;  %s113_s1 = inlined_call_operand.hbm [shape: f32[2,1024], index: 1, kind: output, shape index: {}]  }
   0x1   :  { %7 = vsyncpa [#allocation4], 0  ;;  %s94_s6 = smov [#allocation2]  }
   0x2   :  { %s14_s7 = sshll.u32 %s94_s6, 4  ;;  %s15_s7 = int_to_ptr.vmem [resolvable:$true] %s14_s7 }
   0x3   :  { %s58_s8 = scalar_lea.vmem %s15_s7, 256  ;;  %p63_p1 = scmp.lt.s32.totalorder %s15_s7, %s15_s7 }
   0x4   :  { %p59_p0 = scmp.ne.s32.totalorder %s15_s7, %s58_s8  ;;  %p64_p2 = scmp.lt.s32.totalorder %s58_s8, %s58_s8 }
   0x6   :  { %p65_p3 = por %p64_p2, %p63_p1 }
   0x8   :  { %p66_p4 = pnand %p65_p3, %p59_p0 }
   0xa   :  { %69 = shalt.err (!%p66_p4)
}
   0xb   :  { %17 = dma.hbm_to_vmem [thread:$0]  %s112_s0, 256, %s15_s7, [#allocation3]  }
   0xc   :  { %90 = dma.done.wait [#allocation3], 256  }
   0xd   :  { %91 = vsyncadd [#allocation3], 4294967040  ;;  %v21_v0 = vld [vmem:[#allocation2] sm:$0xff]  ;;  %v22_v1 = vld [vmem:[#allocation2 + $0x8] sm:$0xff]  ;;  %s95_s11 = smov [#allocation5]  }
   0xe   :  { %v23_v2 = vadd.f32 3.0, %v21_v0  ;;  %v24_v3 = vadd.f32 3.0, %v22_v1  ;;  %s39_s12 = sshll.u32 %s95_s11, 4  ;;  %s40_s12 = int_to_ptr.vmem [resolvable:$true] %s39_s12 }
   0xf   :  { %s70_s13 = scalar_lea.vmem %s40_s12, 256  ;;  %p75_p6 = scmp.lt.s32.totalorder %s40_s12, %s40_s12 }
  0x10   :  { %v25_v4 = vmax.f32 %v23_v2, 0.0  ;;  %v26_v5 = vmax.f32 %v24_v3, 0.0  ;;  %p71_p5 = scmp.ne.s32.totalorder %s40_s12, %s70_s13  ;;  %p76_p7 = scmp.lt.s32.totalorder %s70_s13, %s70_s13 }
  0x12   :  { %v27_v6 = vmin.f32 %v25_v4, 6.0  ;;  %v28_v7 = vmin.f32 %v26_v5, 6.0  ;;  %p77_p8 = por %p76_p7, %p75_p6 }
  0x14   :  { %v29_v8 = vmul.f32 0.16666667, %v27_v6  ;;  %v30_v9 = vmul.f32 0.16666667, %v28_v7  ;;  %p78_p9 = pnand %p77_p8, %p71_p5 }
  0x16   :  { %31 = vst [vmem:[#allocation5] sm:$0xff] %v29_v8  ;;  %32 = vst [vmem:[#allocation5 + $0x8] sm:$0xff] %v30_v9 }
  0x17   :  { %81 = shalt.err (!%p78_p9)
}
  0x18   :  { %42 = dma.vmem_to_hbm [thread:$0]  %s40_s12, 256, %s113_s1, [#allocation4]  }
  0x19   :  { %92 = dma.done.wait [#allocation4], 256  }
  0x1a   :  { %93 = vsyncadd [#allocation4], 4294967040 }
  0x1b   :  { %46 = vsyncpa [#allocation3], 1 }
  0x1c   :  { %47 = vsyncpa [#allocation4], 1 }

</bundles_post_ra>
